<compile_context>
chip_gen: v7x
topology: tpu7x:2x2x1
jax: 0.10.0
libtpu: 0.0.40
codegen_flags: <defaults>
</compile_context>

<pallas_src>
import functools

import jax
import jax.numpy as jnp
from jax.experimental import pallas as pl
from jax.experimental.pallas import tpu as pltpu


def _pick_hw_tile(hw, target=2048):
    """Largest divisor of hw that is <= target, preferring multiples of 128 (lane-dense)."""
    if hw <= target:
        return hw
    best = None
    for cand in range(target, 0, -1):
        if hw % cand == 0:
            if cand % 128 == 0:
                return cand
            if best is None:
                best = cand
    return best or hw


def _hash_uniform(shape, base_idx_u32, row_stride, seed_u32):
    """Per-element uniform in [0, 1) from a stateless integer hash (lowbias32-style).

    Keyed on the global element index, so results are independent of the tiling / grid
    sharding, and it needs no TPU-only PRNG primitives (runs in interpret mode too).
    """
    row = jax.lax.broadcasted_iota(jnp.uint32, shape, 0)
    col = jax.lax.broadcasted_iota(jnp.uint32, shape, 1)
    h = base_idx_u32 + row * jnp.uint32(row_stride) + col
    h = h ^ (seed_u32 * jnp.uint32(0x9E3779B9))
    h = h ^ (h >> jnp.uint32(16))
    h = h * jnp.uint32(0x7FEB352D)
    h = h ^ (h >> jnp.uint32(15))
    h = h * jnp.uint32(0x846CA68B)
    h = h ^ (h >> jnp.uint32(16))
    bits24 = (h >> jnp.uint32(8)).astype(jnp.int32)        # 24-bit, fits int32 exactly
    return bits24.astype(jnp.float32) * (1.0 / 16777216.0)


def _bvq_kernel(seed_ref, x_ref, w_ref, b_ref, zflow_ref, loss_ref, acc_ref,
                *, deterministic, codebook, hw_total, t_hw):
    b = pl.program_id(0)            # batch        (parallel)
    j = pl.program_id(1)            # spatial tile (arbitrary / loss accumulation)
    n_hw = pl.num_programs(1)

    # 1x1 conv in NCHW layout: (N, C) @ (C, t_hw) on the MXU, f32 accumulation.
    z_pre = jnp.dot(w_ref[...], x_ref[0], preferred_element_type=jnp.float32)
    z_pre = z_pre + b_ref[...]                      # bias (N, 1) broadcast over lanes
    z = jax.nn.sigmoid(z_pre)                       # proj() Sigmoid activation

    # code_book_loss term: sigmoid applied AGAIN to z, faithful to the reference code.
    s = jax.nn.sigmoid(z)
    sp = s * (1.0 - s)

    # Per-step tile reduce (XLU, otherwise-idle slot) into a tiny (1,1) scalar accumulator --
    # no full-tile scratch traffic, negligible VMEM.
    @pl.when(j == 0)
    def _():
        acc_ref[...] = jnp.zeros_like(acc_ref)
    acc_ref[...] = acc_ref[...] + jnp.sum(sp, keepdims=True)

    # quantizer() -- use_tanh=False path.
    if deterministic:
        z_b = (z > 0.5).astype(jnp.float32)
    else:
        # torch.bernoulli(z): keep 1.0 where uniform u < z.
        # TODO(synk): torch.bernoulli consumes torch's RNG stream; here we use a stateless
        # counter hash, so samples differ from PyTorch while the distribution matches.
        base = (b.astype(jnp.uint32) * jnp.uint32(codebook * hw_total)
                + j.astype(jnp.uint32) * jnp.uint32(t_hw))
        u = _hash_uniform(z.shape, base, hw_total, seed_ref[0].astype(jnp.uint32))
        z_b = (u < z).astype(jnp.float32)

    # z_flow = z_b.detach() + z - z.detach()  -> forward VALUE is exactly z_b.
    # Values are exactly 0.0 / 1.0, so the bf16 store is lossless.
    zflow_ref[0, :, :] = z_b.astype(zflow_ref.dtype)

    # Per-batch partial loss sum, written once per batch.
    @pl.when(j == n_hw - 1)
    def _():
        loss_ref[...] = acc_ref[...].reshape(1, 1, 1)


def binary_vector_quantizer_forward(h, conv_w, conv_b, embed_w=None, *,
                                    deterministic=False, seed=0,
                                    t_hw=None, out_dtype=jnp.bfloat16):
    """Returns (z_flow, code_book_loss) matching the PyTorch forward.

    h:       (B, num_hiddens, H, W)   NCHW, like the PyTorch module
    conv_w:  (codebook_size, num_hiddens, 1, 1)
    conv_b:  (codebook_size,)
    embed_w: (codebook_size, emb_dim) -- accepted for API parity but unused: the PyTorch
             forward computes z_q with it and then discards it, so it is skipped here.
    """
    del embed_w  # z_q is never returned by the PyTorch forward
    B, C, H, W = h.shape
    N = conv_w.shape[0]          # codebook_size
    HW = H * W

    if t_hw is None:
        t_hw = _pick_hw_tile(HW)
    assert HW % t_hw == 0, "spatial tile must divide H*W"

    # NCHW-native: only free reshapes in the wrapper (no transposes). bf16 inputs halve
    # the dominant HBM reads; the MXU accumulates in f32.
    x = h.reshape(B, C, HW).astype(jnp.bfloat16)
    w = conv_w.reshape(N, C).astype(jnp.bfloat16)
    bias = conv_b.reshape(N, 1).astype(jnp.float32)
    seed_arr = jnp.array([seed], dtype=jnp.int32)

    n_hw = HW // t_hw
    kernel = functools.partial(_bvq_kernel, deterministic=deterministic,
                               codebook=N, hw_total=HW, t_hw=t_hw)

    z_flow_flat, loss_part = pl.pallas_call(
        kernel,
        out_shape=(
            jax.ShapeDtypeStruct((B, N, HW), out_dtype),    # z_flow, NCHW with flattened spatial
            jax.ShapeDtypeStruct((B, 1, 1), jnp.float32),   # per-batch loss partial sums
        ),
        grid_spec=pltpu.PrefetchScalarGridSpec(
            num_scalar_prefetch=1,                          # seed -> SMEM
            grid=(B, n_hw),
            in_specs=[
                pl.BlockSpec((1, C, t_hw), lambda b, j, s: (b, 0, j)),   # activations tile
                pl.BlockSpec((N, C), lambda b, j, s: (0, 0)),            # conv weight (resident)
                pl.BlockSpec((N, 1), lambda b, j, s: (0, 0)),            # conv bias (resident)
            ],
            out_specs=(
                pl.BlockSpec((1, N, t_hw), lambda b, j, s: (b, 0, j)),   # z_flow tile
                pl.BlockSpec((1, 1, 1), lambda b, j, s: (b, 0, 0)),      # per-batch loss partial
            ),
            scratch_shapes=[pltpu.VMEM((1, 1), jnp.float32)],            # scalar loss accumulator
        ),
        compiler_params=pltpu.CompilerParams(
            # batch axis shards across TensorCores (v7x megacore); spatial axis carries the
            # per-batch loss accumulation and must stay sequential.
            dimension_semantics=("parallel", "arbitrary")),
    )(seed_arr, x, w, bias)

    code_book_loss = jnp.sum(loss_part) / (B * N * HW)
    z_flow = z_flow_flat.reshape(B, N, H, W)       # free reshape, already NCHW
    return z_flow, code_book_loss


def _reference_forward_deterministic(h, conv_w, conv_b):
    """Pure-JAX reference of the PyTorch forward (deterministic quantizer), using the same
    bf16-input / f32-accumulate matmul precision as the kernel."""
    N, C = conv_w.shape[0], conv_w.shape[1]
    w = conv_w.reshape(N, C).astype(jnp.bfloat16)
    z_pre = jnp.einsum('bchw,nc->bnhw', h.astype(jnp.bfloat16), w,
                       preferred_element_type=jnp.float32)
    z_pre = z_pre + conv_b[None, :, None, None]
    z = jax.nn.sigmoid(z_pre)
    s = jax.nn.sigmoid(z)
    loss = jnp.mean(s * (1.0 - s))
    z_b = (z > 0.5).astype(jnp.float32)
    return z_b, loss


if __name__ == "__main__":
    # Small shapes consistent with the module signature.
    codebook_size = 64
    emb_dim = 16
    num_hiddens = 32
    B, H, W = 2, 16, 16

    key = jax.random.PRNGKey(0)
    k_h, k_w, k_b, k_e = jax.random.split(key, 4)
    h = jax.random.normal(k_h, (B, num_hiddens, H, W), dtype=jnp.float32)
    conv_w = jax.random.normal(k_w, (codebook_size, num_hiddens, 1, 1), jnp.float32) * 0.1
    conv_b = jax.random.normal(k_b, (codebook_size,), jnp.float32) * 0.1
    embed_w = jax.random.normal(k_e, (codebook_size, emb_dim), jnp.float32) * 0.1

    # Deterministic quantizer path — check against the pure-JAX reference.
    z_flow, loss = binary_vector_quantizer_forward(
        h, conv_w, conv_b, embed_w, deterministic=True)
    jax.block_until_ready((z_flow, loss))
    z_ref, loss_ref = _reference_forward_deterministic(h, conv_w, conv_b)
    assert z_flow.shape == (B, codebook_size, H, W)
    assert bool(jnp.all((z_flow == 0.0) | (z_flow == 1.0)))
    mismatch = float(jnp.mean(jnp.abs(z_flow.astype(jnp.float32) - z_ref)))
    assert mismatch < 1e-3, mismatch
    assert jnp.allclose(loss, loss_ref, rtol=1e-4, atol=1e-4), (float(loss), float(loss_ref))

    # Stochastic (bernoulli) path — default forward behaviour; sanity-check outputs.
    z_flow_s, loss_s = binary_vector_quantizer_forward(
        h, conv_w, conv_b, embed_w, deterministic=False, seed=123)
    jax.block_until_ready((z_flow_s, loss_s))
    assert z_flow_s.shape == (B, codebook_size, H, W)
    assert bool(jnp.all((z_flow_s == 0.0) | (z_flow_s == 1.0)))
    assert jnp.allclose(loss_s, loss_ref, rtol=1e-4, atol=1e-4)   # loss independent of sampling
    frac_ones = float(jnp.mean(z_flow_s.astype(jnp.float32)))
    assert 0.3 < frac_ones < 0.7, frac_ones   # E[z] ~= 0.5 for this input distribution

    print("KERNEL_OK")
</pallas_src>

<mosaic_0001>
module attributes {stable_mosaic.version = 11 : i64} {
  func.func @_bvq_kernel(%arg0: i32, %arg1: i32, %arg2: memref<1xi32, #tpu.memory_space<smem>>, %arg3: memref<1x32x256xbf16, #tpu.memory_space<vmem>>, %arg4: memref<64x32xbf16, #tpu.memory_space<vmem>>, %arg5: memref<64x1xf32, #tpu.memory_space<vmem>>, %arg6: memref<1x64x256xbf16, #tpu.memory_space<vmem>>, %arg7: memref<1x1x1xf32, #tpu.memory_space<vmem>>, %arg8: memref<1x1xf32, #tpu.memory_space<vmem>>) attributes {dimension_semantics = [#tpu.dimension_semantics<parallel>, #tpu.dimension_semantics<arbitrary>], iteration_bounds = array<i64: 2, 1>, scalar_prefetch = 1 : i64, scratch_operands = 1 : i64, tpu.core_type = #tpu.core_type<tc>, window_params = [{transform_indices = @transform_0, window_bounds = array<i64: 1, 32, 256>}, {pipeline_mode = #tpu.pipeline_mode<synchronous>, transform_indices = @transform_1, window_bounds = array<i64: 64, 32>}, {pipeline_mode = #tpu.pipeline_mode<synchronous>, transform_indices = @transform_2, window_bounds = array<i64: 64, 1>}, {transform_indices = @transform_3, window_bounds = array<i64: 1, 64, 256>}, {transform_indices = @transform_4, window_bounds = array<i64: 1, 1, 1>}]} {
    %c0 = arith.constant 0 : index
    %c0_0 = arith.constant 0 : index
    %0 = vector.load %arg4[%c0, %c0_0] : memref<64x32xbf16, #tpu.memory_space<vmem>>, vector<64x32xbf16>
    %c0_1 = arith.constant 0 : index
    %c0_2 = arith.constant 0 : index
    %c0_3 = arith.constant 0 : index
    %1 = vector.load %arg3[%c0_1, %c0_2, %c0_3] : memref<1x32x256xbf16, #tpu.memory_space<vmem>>, vector<1x32x256xbf16>
    %2 = vector.shape_cast %1 : vector<1x32x256xbf16> to vector<32x256xbf16>
    %cst = arith.constant dense<0.000000e+00> : vector<64x256xf32>
    %3 = tpu.matmul %0, %2, %cst {dimension_numbers = #tpu.dot_dimension_numbers<[1], [0], [0], [1], [0, 0, 1, 1], [], []>} : vector<64x32xbf16>, vector<32x256xbf16>, vector<64x256xf32> -> vector<64x256xf32>
    %c0_4 = arith.constant 0 : index
    %c0_5 = arith.constant 0 : index
    %4 = vector.load %arg5[%c0_4, %c0_5] : memref<64x1xf32, #tpu.memory_space<vmem>>, vector<64x1xf32>
    %5 = vector.broadcast %4 : vector<64x1xf32> to vector<64x256xf32>
    %6 = arith.addf %3, %5 : vector<64x256xf32>
    %7 = arith.negf %6 : vector<64x256xf32>
    %8 = math.exp %7 : vector<64x256xf32>
    %cst_6 = arith.constant 1.000000e+00 : f32
    %9 = vector.broadcast %cst_6 : f32 to vector<64x256xf32>
    %10 = arith.addf %9, %8 : vector<64x256xf32>
    %11 = arith.divf %9, %10 : vector<64x256xf32>
    %12 = arith.negf %11 : vector<64x256xf32>
    %13 = math.exp %12 : vector<64x256xf32>
    %cst_7 = arith.constant 1.000000e+00 : f32
    %14 = vector.broadcast %cst_7 : f32 to vector<64x256xf32>
    %15 = arith.addf %14, %13 : vector<64x256xf32>
    %16 = arith.divf %14, %15 : vector<64x256xf32>
    %cst_8 = arith.constant 1.000000e+00 : f32
    %17 = vector.broadcast %cst_8 : f32 to vector<64x256xf32>
    %18 = arith.subf %17, %16 : vector<64x256xf32>
    %19 = arith.mulf %16, %18 : vector<64x256xf32>
    %c0_i32 = arith.constant 0 : i32
    %20 = arith.cmpi eq, %arg1, %c0_i32 : i32
    %21 = arith.extui %20 : i1 to i32
    %c0_i32_9 = arith.constant 0 : i32
    %22 = arith.cmpi ne, %21, %c0_i32_9 : i32
    scf.if %22 {
      %cst_21 = arith.constant 0.000000e+00 : f32
      %42 = vector.broadcast %cst_21 : f32 to vector<1x1xf32>
      %c0_22 = arith.constant 0 : index
      %c0_23 = arith.constant 0 : index
      %43 = vector.load %arg8[%c0_22, %c0_23] : memref<1x1xf32, #tpu.memory_space<vmem>>, vector<1x1xf32>
      tpu.vector_store %arg8[%c0_22, %c0_23], %42 {strides = array<i32>} : memref<1x1xf32, #tpu.memory_space<vmem>>, vector<1x1xf32>,
    } else {
    }
    %c0_10 = arith.constant 0 : index
    %c0_11 = arith.constant 0 : index
    %23 = vector.load %arg8[%c0_10, %c0_11] : memref<1x1xf32, #tpu.memory_space<vmem>>, vector<1x1xf32>
    %24 = vector.shape_cast %19 : vector<64x256xf32> to vector<1x64x256xf32>
    %cst_12 = arith.constant dense<0.000000e+00> : vector<1xf32>
    %25 = vector.multi_reduction <add>, %24, %cst_12 [1, 2] : vector<1x64x256xf32> to vector<1xf32>
    %26 = vector.shape_cast %25 : vector<1xf32> to vector<1x1x1xf32>
    %27 = vector.extract %26[0, 0, 0] : f32 from vector<1x1x1xf32>
    %28 = vector.broadcast %27 : f32 to vector<1x1xf32>
    %29 = arith.addf %23, %28 : vector<1x1xf32>
    %c0_13 = arith.constant 0 : index
    %c0_14 = arith.constant 0 : index
    %30 = vector.load %arg8[%c0_13, %c0_14] : memref<1x1xf32, #tpu.memory_space<vmem>>, vector<1x1xf32>
    tpu.vector_store %arg8[%c0_13, %c0_14], %29 {strides = array<i32>} : memref<1x1xf32, #tpu.memory_space<vmem>>, vector<1x1xf32>,
    %cst_15 = arith.constant 5.000000e-01 : f32
    %31 = vector.broadcast %cst_15 : f32 to vector<64x256xf32>
    %32 = arith.cmpf ogt, %11, %31 : vector<64x256xf32>
    %33 = arith.extui %32 : vector<64x256xi1> to vector<64x256xi32>
    %34 = arith.sitofp %33 : vector<64x256xi32> to vector<64x256xf32>
    %35 = arith.truncf %34 : vector<64x256xf32> to vector<64x256xbf16>
    %c0_16 = arith.constant 0 : index
    %c0_17 = arith.constant 0 : index
    %c0_18 = arith.constant 0 : index
    %36 = vector.load %arg6[%c0_16, %c0_17, %c0_18] : memref<1x64x256xbf16, #tpu.memory_space<vmem>>, vector<1x64x256xbf16>
    %37 = vector.shape_cast %36 : vector<1x64x256xbf16> to vector<64x256xbf16>
    %38 = vector.shape_cast %35 : vector<64x256xbf16> to vector<1x64x256xbf16>
    tpu.vector_store %arg6[%c0_16, %c0_17, %c0_18], %38 {strides = array<i32>} : memref<1x64x256xbf16, #tpu.memory_space<vmem>>, vector<1x64x256xbf16>,
    %c0_i32_19 = arith.constant 0 : i32
    %39 = arith.cmpi eq, %arg1, %c0_i32_19 : i32
    %40 = arith.extui %39 : i1 to i32
    %c0_i32_20 = arith.constant 0 : i32
    %41 = arith.cmpi ne, %40, %c0_i32_20 : i32
    scf.if %41 {
      %c0_21 = arith.constant 0 : index
      %c0_22 = arith.constant 0 : index
      %42 = vector.load %arg8[%c0_21, %c0_22] : memref<1x1xf32, #tpu.memory_space<vmem>>, vector<1x1xf32>
      %43 = vector.shape_cast %42 : vector<1x1xf32> to vector<1x1x1xf32>
      %c0_23 = arith.constant 0 : index
      %c0_24 = arith.constant 0 : index
      %c0_25 = arith.constant 0 : index
      %44 = vector.load %arg7[%c0_23, %c0_24, %c0_25] : memref<1x1x1xf32, #tpu.memory_space<vmem>>, vector<1x1x1xf32>
      tpu.vector_store %arg7[%c0_23, %c0_24, %c0_25], %43 {strides = array<i32>} : memref<1x1x1xf32, #tpu.memory_space<vmem>>, vector<1x1x1xf32>,
    } else {
    }
    return
  }
  func.func @transform_0(%arg0: i32, %arg1: i32, %arg2: memref<1xi32, #tpu.memory_space<smem>>) -> (i32, i32, i32) {
    %c0_i32 = arith.constant 0 : i32
    %c0_i32_0 = arith.constant 0 : i32
    return %arg0, %c0_i32, %arg1 : i32, i32, i32
  }
  func.func @transform_1(%arg0: i32, %arg1: i32, %arg2: memref<1xi32, #tpu.memory_space<smem>>) -> (i32, i32) {
    %c0_i32 = arith.constant 0 : i32
    %c0_i32_0 = arith.constant 0 : i32
    %c0_i32_1 = arith.constant 0 : i32
    return %c0_i32, %c0_i32_0 : i32, i32
  }
  func.func @transform_2(%arg0: i32, %arg1: i32, %arg2: memref<1xi32, #tpu.memory_space<smem>>) -> (i32, i32) {
    %c0_i32 = arith.constant 0 : i32
    %c0_i32_0 = arith.constant 0 : i32
    %c0_i32_1 = arith.constant 0 : i32
    return %c0_i32, %c0_i32_0 : i32, i32
  }
  func.func @transform_3(%arg0: i32, %arg1: i32, %arg2: memref<1xi32, #tpu.memory_space<smem>>) -> (i32, i32, i32) {
    %c0_i32 = arith.constant 0 : i32
    %c0_i32_0 = arith.constant 0 : i32
    return %arg0, %c0_i32, %arg1 : i32, i32, i32
  }
  func.func @transform_4(%arg0: i32, %arg1: i32, %arg2: memref<1xi32, #tpu.memory_space<smem>>) -> (i32, i32, i32) {
    %c0_i32 = arith.constant 0 : i32
    %c0_i32_0 = arith.constant 0 : i32
    %c0_i32_1 = arith.constant 0 : i32
    return %arg0, %c0_i32, %c0_i32_0 : i32, i32, i32
  }
}

</mosaic_0001>

<bundles_post_ra>
// kernel: tpu_custom_call.1
= control target key start
LH: loop header
LB: loop body
LE: loop exit
PB: predicated region body
PF: predicated region fallthrough
CT: control target
= control target key end

     0   :  { %12 = vsyncpa [#allocation6], 0  ;;  %s1558_s0 = inlined_call_operand.<no memory space> [shape: s32[1], index: 0, kind: input, shape index: {}]   ;;  %s1559_s1 = inlined_call_operand.vmem [shape: bf16[2,32,256], index: 1, kind: input, shape index: {}]   ;;  %s1560_s2 = inlined_call_operand.vmem [shape: bf16[64,32], index: 2, kind: input, shape index: {}]   ;;  %s1561_s3 = inlined_call_operand.vmem [shape: f32[64,1], index: 3, kind: input, shape index: {}]   ;;  %s1562_s4 = inlined_call_operand.hbm [shape: bf16[2,64,256], index: 4, kind: output, shape index: {0}]   ;;  %s1563_s5 = inlined_call_operand.vmem [shape: f32[2,1,1], index: 5, kind: output, shape index: {1}]  }
   0x1   :  { %14 = vsyncpa [#allocation6 + $0x1], 0  ;;  %s1324_s18 = smov 0   ;;  %s1326_s0 = smov 0  }
   0x2   :  { %s1328_s19 = smov 0   ;;  %s1330_s20 = smov 0  }
   0x3   :  { %s1332_s21 = smov 0   ;;  %s1334_s22 = smov 0  }
   0x4 LB: > { %s913_s23 = sadd.s32 4294967295, %s1287_s22   ;;  %s914_s24 = sadd.s32 4294967294, %s1287_s22   ;;  %s1287_s22 = sphi %s1334_s22, %s20_s22   ;;  %s1283_s21 = sphi %s1332_s21, %s1570_s21   ;;  %s1279_s20 = sphi %s1330_s20, %s1569_s20   ;;  %s1275_s19 = sphi %s1328_s19, %s1568_s19   ;;  %s1271_s0 = sphi %s1326_s0, %s1567_s0   ;;  %s1267_s18 = sphi %s1324_s18, %s1566_s18  }
   0x5   : > { %s32_s25 = sadd.s32 1, %s1283_s21  ;;  %s111_s26 = sadd.s32 1, %s1275_s19 }
   0x6   : > { %p34_p0 = scmp.ge.s32.totalorder %s32_s25, 2  ;;  %p121_p1 = scmp.ne.s32.totalorder %s1275_s19, %s1271_s0 }
   0x7   : > { %p122_p2 = scmp.eq.s32.totalorder %s913_s23, 1  ;;  %p127_p3 = scmp.ne.s32.totalorder %s1271_s0, %s1267_s18 }
   0x8   : > { %s1572_s25 = smov (%p34_p0, %s32_s25), 0  ;;  %p128_p5 = scmp.eq.s32.totalorder %s914_s24, 1 }
   0x9   : > { %p1364_p4 = por %p122_p2, %p121_p1  ;;  %s106_s28 = ssub.s32 %s1283_s21, %s1572_s25 }
   0xa   : > { %p917_p6 = scmp.ge.s32.totalorder %s1287_s22, 1  ;;  %p109_p7 = scmp.eq.s32.totalorder %s106_s28, 0 }
   0xb   : > { %p1371_p8 = por %p128_p5, %p127_p3  ;;  %p191_p9 = scmp.lt.s32.totalorder %s1287_s22, 3 }
   0xc   : > { %s1377_s30 = scalar_select %p109_p7, %s1275_s19, %s111_s26  }
   0xd   : > { %p192_p10 = pnand %p917_p6, %p191_p9 }
   0xe   : > { %p225_p11 = scmp.lt.s32.totalorder (!%p192_p10), %s1279_s20, 1  ;;  %v1289_v0 = vmov (!%p192_p10), 0   ;;  %v251_v1 = vld [vmem:[%s1561_s3] sm:$0xff] (!%p192_p10)  ;;  %v253_v2 = vld [vmem:[%s1561_s3 + $0x10] sm:$0xff] (!%p192_p10)  ;;  %v252_v6 = vld [vmem:[%s1561_s3 + $0x8] sm:$0xff] (!%p192_p10)  ;;  %vm339_vm0 = vcmask (!%p192_p10), 261120  }
   0xf   : > { %195 = sbr.rel (%p192_p10) target bundleno = 590 (0x24e), region = 32  ;;  %384 = vmatprep.mubr.bf16.mxu0 (!%p192_p10), %v1289_v0  ;;  %404 = vmatprep.mubr.bf16.mxu1 (!%p192_p10), %v1289_v0  ;;  %v254_v7 = vld [vmem:[%s1561_s3 + $0x18] sm:$0xff] (!%p192_p10)  ;;  %v1077_v9 = vld [vmem:[%s1560_s2] sm:$0xff] (!%p192_p10)   ;;  %v1078_v10 = vld [vmem:[%s1560_s2 + $0x10] sm:$0xff] (!%p192_p10)   ;;  %s216_s26 = sand.u32 (!%p192_p10), 1, %s1271_s0  }
  0x10   : > { %1069 = vset.pattern.permute.xlu0 (!%p192_p10), %v1289_v0  ;;  %1070 = vset.pattern.permute.xlu1 (!%p192_p10), %v1289_v0  ;;  %v255_v11 = vld [vmem:[%s1561_s3 + $0x20] sm:$0xff] (!%p192_p10)  ;;  %v256_v12 = vld [vmem:[%s1561_s3 + $0x28] sm:$0xff] (!%p192_p10)  ;;  %v257_v13 = vld [vmem:[%s1561_s3 + $0x30] sm:$0xff] (!%p192_p10)  ;;  %s918_s28 = sshll.u32 (!%p192_p10), %s216_s26, 6  ;;  %s1003_s8 = sshll.u32 (!%p192_p10), %s1279_s20, 10 }
  0x11   : > { %261 = vperm.xlu0 (!%p192_p10), %1069, %v251_v1   ;;  %271 = vperm.xlu1 (!%p192_p10), %1070, %v253_v2   ;;  %v258_v14 = vld [vmem:[%s1561_s3 + $0x38] sm:$0xff] (!%p192_p10)  ;;  %v1079_v15 = vld [vmem:[%s1560_s2 + $0x8] sm:$0xff] (!%p192_p10)   ;;  %s1499_s11 = scalar_lea.hbm (!%p192_p10), %s1562_s4, %s1003_s8  ;;  %s1506_s13 = scalar_lea.sflag (!%p192_p10), [#allocation6], %s216_s26 }
  0x12   : > { %v1080_v16 = vld [vmem:[%s1560_s2 + $0x18] sm:$0xff] (!%p192_p10)  }
  0x15   : > { %266 = vperm.xlu0 (!%p192_p10), %1069, %v252_v6   ;;  %276 = vperm.xlu1 (!%p192_p10), %1070, %v254_v7  }
  0x16   : > { %s1381_s6 = scalar_select %p225_p11, %s1279_s20, 1 }
  0x17   : > { %s1291_s20 = smov [#allocation5]  }
  0x18   : > { %s994_s7 = sshll.u32 %s1381_s6, 5  ;;  %s1213_s15 = sshll.u32 %s1291_s20, 4  ;;  %s1214_s15 = int_to_ptr.vmem [resolvable:$false] %s1213_s15 }
  0x19   : > { %s232_s12 = scalar_lea.vmem %s1559_s1, %s994_s7  ;;  %281 = vperm.xlu0 %1069, %v255_v11   ;;  %286 = vperm.xlu1 %1070, %v256_v12   ;;  %s1449_s7 = scalar_lea.vmem [#allocation5], %s918_s28 }
  0x1a   : > { %v1071_v3 = vld [vmem:[%s232_s12 + $0x4] ss:$8 sps:$4 sm:$0xff]   ;;  %v1073_v4 = vld [vmem:[%s232_s12] ss:$8 sps:$4 sm:$0xff]   ;;  %v1074_v5 = vld [vmem:[%s232_s12 + $0x14] ss:$8 sps:$4 sm:$0xff]  }
  0x1b   : > { %352 = vmatprep.subr.bf16.mxu0 %v1071_v3  ;;  %1004 = vmatprep.subr.bf16.mxu1 %v1071_v3  ;;  %v1076_v8 = vld [vmem:[%s232_s12 + $0x10] ss:$8 sps:$4 sm:$0xff]   ;;  %s812_s12 = sshll.u32 %s1449_s7, 4  ;;  %s1215_s16 = scalar_lea.vmem %s1214_s15, 2048  ;;  %s1502_s12 = int_to_ptr.vmem [resolvable:$true] %s812_s12 }
  0x1c   : > { %353 = vmatpush1.bf16.msra.mxu0 %v1073_v4  ;;  %1006 = vmatpush1.bf16.msra.mxu1 %v1073_v4  ;;  %s1209_s14 = scalar_lea.vmem %s1502_s12, 1024  ;;  %p1216_p1 = scmp.lt.s32.totalorder %s1502_s12, %s1214_s15 }
  0x1d   : > { %354 = vmatprep.subr.bf16.mxu0 %v1074_v5  ;;  %1005 = vmatprep.subr.bf16.mxu1 %v1074_v5  ;;  %p1210_p12 = scmp.ne.s32.totalorder %s1502_s12, %s1209_s14  ;;  %p1217_p2 = scmp.lt.s32.totalorder %s1215_s16, %s1209_s14 }
  0x1e   : > { %291 = vperm.xlu0 %1069, %v257_v13   ;;  %296 = vperm.xlu1 %1070, %v258_v14  }
  0x1f   : > { %p1211_p13 = pnand %p1210_p12, %p1364_p4  ;;  %p1218_p3 = por %p1217_p2, %p1216_p1 }
  0x20   : > { %355 = vmatpush1.bf16.msra.mxu0 %v1076_v8  ;;  %1007 = vmatpush1.bf16.msra.mxu1 %v1076_v8 }
  0x21   : > { %p1212_p0 = pneg %p1211_p13 }
  0x23   : > { %929 = vmatmul.mubr.msk.bf16.vlgmr.msra.gmra.mrb[0].mxu0 %vm339_vm0, %v1077_v9  ;;  %931 = vmatmul.mubr.msk.bf16.vlgmr.msra.gmra.mrb[0].mxu1 %vm339_vm0, %v1078_v10  ;;  %p1219_p5 = pnand %p1218_p3, %p1212_p0 }
  0x24   : > { %394 = vmatprep.mubr.bf16.mxu0 %v1289_v0  ;;  %414 = vmatprep.mubr.bf16.mxu1 %v1289_v0 }
  0x2b   : > { %930 = vmatmul.mubr.msk.bf16.gmra.mrb[4].mxu0 %vm339_vm0, %v1079_v15  ;;  %932 = vmatmul.mubr.msk.bf16.gmra.mrb[4].mxu1 %vm339_vm0, %v1080_v16 }
  0x90   : > { %v262_v17 = vpop.permute.xlu0 %261  ;;  %v272_v18 = vpop.permute.xlu1 %271 }
  0x94   : > { %v267_v19 = vpop.permute.xlu0 %266  ;;  %v1423_v20 = vpop.permute.xlu1 %276 }
  0x98   : > { %v282_v21 = vpop.permute.xlu0 %281  ;;  %v287_v22 = vpop.permute.xlu1 %286 }
  0x9d   : > { %v292_v45 = vpop.permute.xlu0 %291 }
  0xf6   : > { %v386_v23 = vpop.f32.mrb[0].mxu0  ;;  %v406_v24 = vpop.f32.mrb[0].mxu1 }
  0xf7   : > { %v387_v25 = vadd.f32 %v386_v23, %v262_v17  ;;  %v407_v26 = vadd.f32 %v406_v24, %v282_v21  ;;  %v388_v27 = vpop.f32.mrb[1].mxu0  ;;  %v408_v28 = vpop.f32.mrb[1].mxu1 }
  0xf8   : > { %v389_v29 = vadd.f32 %v388_v27, %v262_v17  ;;  %v409_v30 = vadd.f32 %v408_v28, %v282_v21  ;;  %v390_v31 = vpop.f32.mrb[2].mxu0  ;;  %v410_v32 = vpop.f32.mrb[2].mxu1 }
  0xf9   : > { %v933_v33 = vmul.f32 -1.442695, %v387_v25  ;;  %v941_v34 = vmul.f32 -1.442695, %v407_v26  ;;  %v391_v35 = vadd.f32 %v390_v31, %v267_v19  ;;  %v392_v36 = vpop.f32.mrb[3].mxu0  ;;  %v411_v37 = vadd.f32 %v410_v32, %v287_v22  ;;  %v412_v38 = vpop.f32.mrb[3].mxu1 }
  0xfa   : > { %v934_v39 = vmul.f32 -1.442695, %v389_v29  ;;  %v942_v40 = vmul.f32 -1.442695, %v409_v30  ;;  %v393_v41 = vadd.f32 %v392_v36, %v267_v19  ;;  %v413_v42 = vadd.f32 %v412_v38, %v287_v22 }
  0xfb   : > { %1081 = vpow2.f32 %v933_v33  ;;  %v935_v43 = vmul.f32 -1.442695, %v391_v35  ;;  %v943_v46 = vmul.f32 -1.442695, %v411_v37  ;;  %v1290_v32 = vmov 0.0  }
  0xfc   : > { %1083 = vpow2.f32 %v941_v34  ;;  %v936_v44 = vmul.f32 -1.442695, %v393_v41  ;;  %v944_v47 = vmul.f32 -1.442695, %v413_v42 }
  0xfd   : > { %1085 = vpow2.f32 %v934_v39 }
  0xfe   : > { %1087 = vpow2.f32 %v942_v40  ;;  %v396_v48 = vpop.f32.mrb[4].mxu0  ;;  %v416_v49 = vpop.f32.mrb[4].mxu1 }
  0xff   : > { %1089 = vpow2.f32 %v935_v43  ;;  %v397_v50 = vadd.f32 %v396_v48, %v272_v18  ;;  %v417_v51 = vadd.f32 %v416_v49, %v292_v45  ;;  %v398_v52 = vpop.f32.mrb[5].mxu0  ;;  %v418_v53 = vpop.f32.mrb[5].mxu1 }
 0x100   : > { %1091 = vpow2.f32 %v936_v44  ;;  %v399_v54 = vadd.f32 %v398_v52, %v272_v18  ;;  %v419_v55 = vadd.f32 %v418_v53, %v292_v45  ;;  %v400_v56 = vpop.f32.mrb[6].mxu0  ;;  %v1425_v57 = vpop.f32.mrb[6].mxu1 }
 0x101   : > { %1093 = vpow2.f32 %v943_v46  ;;  %v937_v58 = vmul.f32 -1.442695, %v397_v50  ;;  %v945_v59 = vmul.f32 -1.442695, %v417_v51  ;;  %v401_v60 = vadd.f32 %v400_v56, %v1423_v20  ;;  %v1428_v61 = vpop.f32.mrb[7].mxu0  ;;  %v1430_v62 = vpop.f32.mrb[7].mxu1 }
 0x102   : > { %1095 = vpow2.f32 %v944_v47  ;;  %v938_v63 = vmul.f32 -1.442695, %v399_v54  ;;  %v946_v0 = vmul.f32 -1.442695, %v419_v55 }
 0x103   : > { %1097 = vpow2.f32 %v937_v58  ;;  %v939_v1 = vmul.f32 -1.442695, %v401_v60 }
 0x104   : > { %1099 = vpow2.f32 %v945_v59 }
 0x105   : > { %v1082_v2 = vpop.eup %1081  ;;  %1101 = vpow2.f32 %v938_v63 }
 0x106   : > { %v1084_v3 = vpop.eup %1083  ;;  %v473_v4 = vadd.f32 1.0, %v1082_v2  ;;  %1103 = vpow2.f32 %v946_v0 }
 0x107   : > { %v1086_v5 = vpop.eup %1085  ;;  %v481_v6 = vadd.f32 1.0, %v1084_v3  ;;  %1105 = vpow2.f32 %v939_v1 }
 0x108   : > { %v1088_v7 = vpop.eup %1087  ;;  %1107 = vrcp.f32 %v473_v4  ;;  %v474_v8 = vadd.f32 1.0, %v1086_v5 }
 0x109   : > { %v1090_v9 = vpop.eup %1089  ;;  %1109 = vrcp.f32 %v481_v6  ;;  %v482_v10 = vadd.f32 1.0, %v1088_v7 }
 0x10a   : > { %v1092_v11 = vpop.eup %1091  ;;  %1111 = vrcp.f32 %v474_v8  ;;  %v475_v12 = vadd.f32 1.0, %v1090_v9 }
 0x10b   : > { %v1094_v13 = vpop.eup %1093  ;;  %1113 = vrcp.f32 %v482_v10  ;;  %v476_v14 = vadd.f32 1.0, %v1092_v11 }
 0x10c   : > { %v1096_v15 = vpop.eup %1095  ;;  %1115 = vrcp.f32 %v475_v12  ;;  %v483_v16 = vadd.f32 1.0, %v1094_v13 }
 0x10d   : > { %v1098_v17 = vpop.eup %1097  ;;  %1117 = vrcp.f32 %v476_v14  ;;  %v484_v18 = vadd.f32 1.0, %v1096_v15  ;;  %v297_v14 = vpop.permute.xlu1 %296 }
 0x10e   : > { %v1100_v19 = vpop.eup %1099  ;;  %1119 = vrcp.f32 %v483_v16  ;;  %v477_v21 = vadd.f32 1.0, %v1098_v17  ;;  %v421_v16 = vadd.f32 %v1425_v57, %v297_v14  ;;  %v403_v17 = vadd.f32 %v1428_v61, %v1423_v20 }
 0x10f   : > { %v1102_v22 = vpop.eup %1101  ;;  %1121 = vrcp.f32 %v484_v18  ;;  %v485_v23 = vadd.f32 1.0, %v1100_v19  ;;  %v423_v19 = vadd.f32 %v1430_v62, %v297_v14 }
 0x110   : > { %v1104_v24 = vpop.eup %1103  ;;  %1123 = vrcp.f32 %v477_v21  ;;  %v478_v25 = vadd.f32 1.0, %v1102_v22 }
 0x111   : > { %v1106_v26 = vpop.eup %1105  ;;  %1125 = vrcp.f32 %v485_v23  ;;  %v486_v27 = vadd.f32 1.0, %v1104_v24  ;;  %v947_v23 = vmul.f32 -1.442695, %v421_v16 }
 0x112   : > { %v1108_v28 = vpop.eup %1107  ;;  %1127 = vrcp.f32 %v478_v25  ;;  %v479_v34 = vadd.f32 1.0, %v1106_v26  ;;  %v940_v25 = vmul.f32 -1.442695, %v403_v17 }
 0x113   : > { %v1433_v29 = vpop.eup %1109  ;;  %v949_v30 = vmul.f32 -1.442695, %v1108_v28  ;;  %vm684_vm1 = vcmp.gt.f32.partialorder %v1108_v28, 0.5  ;;  %1129 = vrcp.f32 %v486_v27  ;;  %v948_v27 = vmul.f32 -1.442695, %v423_v19 }
 0x114   : > { %v1112_v31 = vpop.eup %1111  ;;  %v965_v33 = vsel %vm684_vm1, 1.0, %v1290_v32  ;;  %vm692_vm2 = vcmp.gt.f32.partialorder %v1433_v29, 0.5  ;;  %vm653_vm1 = vcmask 0  }
 0x115   : > { %v1439_v35 = vpop.eup %1113  ;;  %1131 = vpow2.f32 %v949_v30  ;;  %v973_v36 = vsel %vm692_vm2, 1.0, %v1290_v32  ;;  %v950_v37 = vmul.f32 -1.442695, %v1112_v31  ;;  %vm685_vm3 = vcmp.gt.f32.partialorder %v1112_v31, 0.5  ;;  %654 = vst.msk [vmem:[#allocation2] sm:$0x1] %vm653_vm1, %v1290_v32 }
 0x116   : > { %v1116_v38 = vpop.eup %1115  ;;  %v966_v39 = vsel %vm685_vm3, 1.0, %v1290_v32  ;;  %vm693_vm4 = vcmp.gt.f32.partialorder %v1439_v35, 0.5 }
 0x117   : > { %v1118_v40 = vpop.eup %1117  ;;  %1133 = vpow2.f32 %v950_v37  ;;  %v995_v41 = vpack.c.bf16 %v966_v39, %v965_v33  ;;  %v974_v42 = vsel %vm693_vm4, 1.0, %v1290_v32  ;;  %v951_v43 = vmul.f32 -1.442695, %v1116_v38 }
 0x118   : > { %v1445_v44 = vpop.eup %1119  ;;  %v999_v45 = vpack.c.bf16 %v974_v42, %v973_v36  ;;  %vm686_vm5 = vcmp.gt.f32.partialorder %v1116_v38, 0.5  ;;  %v952_v46 = vmul.f32 -1.442695, %v1118_v40  ;;  %1135 = vrcp.f32 %v479_v34 }
 0x119   : > { %v1447_v47 = vpop.eup %1121  ;;  %780 = vst [vmem:[%s1449_s7] sm:$0xff] %v995_v41  ;;  %1137 = vpow2.f32 %v951_v43  ;;  %v967_v48 = vsel %vm686_vm5, 1.0, %v1290_v32  ;;  %vm687_vm6 = vcmp.gt.f32.partialorder %v1118_v40, 0.5  ;;  %vm694_vm7 = vcmp.gt.f32.partialorder %v1445_v44, 0.5 }
 0x11a   : > { %v1124_v49 = vpop.eup %1123  ;;  %784 = vst [vmem:[%s1449_s7 + $0x20] sm:$0xff] %v999_v45  ;;  %1139 = vpow2.f32 %v952_v46  ;;  %v968_v50 = vsel %vm687_vm6, 1.0, %v1290_v32  ;;  %v975_v53 = vsel %vm694_vm7, 1.0, %v1290_v32  ;;  %vm695_vm8 = vcmp.gt.f32.partialorder %v1447_v47, 0.5 }
 0x11b   : > { %v1456_v51 = vpop.eup %1125  ;;  %v996_v52 = vpack.c.bf16 %v968_v50, %v967_v48  ;;  %v976_v55 = vsel %vm695_vm8, 1.0, %v1290_v32  ;;  %v953_v56 = vmul.f32 -1.442695, %v1124_v49  ;;  %vm688_vm9 = vcmp.gt.f32.partialorder %v1124_v49, 0.5 }
 0x11c   : > { %v1128_v54 = vpop.eup %1127  ;;  %v1000_v59 = vpack.c.bf16 %v976_v55, %v975_v53  ;;  %v969_v60 = vsel %vm688_vm9, 1.0, %v1290_v32  ;;  %vm696_vm10 = vcmp.gt.f32.partialorder %v1456_v51, 0.5 }
 0x11d   : > { %v1461_v58 = vpop.eup %1129  ;;  %781 = vst [vmem:[%s1449_s7 + $0x8] sm:$0xff] %v996_v52  ;;  %1141 = vpow2.f32 %v953_v56  ;;  %v977_v63 = vsel %vm696_vm10, 1.0, %v1290_v32  ;;  %v954_v0 = vmul.f32 -1.442695, %v1128_v54  ;;  %vm689_vm11 = vcmp.gt.f32.partialorder %v1128_v54, 0.5 }
 0x11e   : > { %785 = vst [vmem:[%s1449_s7 + $0x28] sm:$0xff] %v1000_v59  ;;  %v970_v2 = vsel %vm689_vm11, 1.0, %v1290_v32  ;;  %vm697_vm12 = vcmp.gt.f32.partialorder %v1461_v58, 0.5 }
 0x11f   : > { %v1132_v1 = vpop.eup %1131  ;;  %1143 = vpow2.f32 %v954_v0  ;;  %v997_v4 = vpack.c.bf16 %v970_v2, %v969_v60  ;;  %v978_v5 = vsel %vm697_vm12, 1.0, %v1290_v32  ;;  %v957_v0 = vmul.f32 -1.442695, %v1433_v29 }
 0x120   : > { %v569_v3 = vadd.f32 1.0, %v1132_v1  ;;  %v1001_v7 = vpack.c.bf16 %v978_v5, %v977_v63  ;;  %v958_v1 = vmul.f32 -1.442695, %v1439_v35  ;;  %v960_v5 = vmul.f32 -1.442695, %v1447_v47 }
 0x121   : > { %v1134_v6 = vpop.eup %1133  ;;  %782 = vst [vmem:[%s1449_s7 + $0x10] sm:$0xff] %v997_v4 }
 0x122   : > { %v1471_v8 = vpop.eup %1135  ;;  %1145 = vrcp.f32 %v569_v3  ;;  %v570_v9 = vadd.f32 1.0, %v1134_v6  ;;  %786 = vst [vmem:[%s1449_s7 + $0x30] sm:$0xff] %v1001_v7  ;;  %v959_v3 = vmul.f32 -1.442695, %v1445_v44  ;;  %v961_v44 = vmul.f32 -1.442695, %v1456_v51 }
 0x123   : > { %v1138_v10 = vpop.eup %1137  ;;  %v955_v15 = vmul.f32 -1.442695, %v1471_v8  ;;  %vm690_vm13 = vcmp.gt.f32.partialorder %v1471_v8, 0.5  ;;  %v962_v8 = vmul.f32 -1.442695, %v1461_v58 }
 0x124   : > { %v1140_v11 = vpop.eup %1139  ;;  %1147 = vrcp.f32 %v570_v9  ;;  %v571_v12 = vadd.f32 1.0, %v1138_v10  ;;  %v971_v10 = vsel %vm690_vm13, 1.0, %v1290_v32 }
 0x125   : > { %v572_v13 = vadd.f32 1.0, %v1140_v11 }
 0x126   : > { %1149 = vrcp.f32 %v571_v12 }
 0x127   : > { %1151 = vrcp.f32 %v572_v13  ;;  %v1142_v18 = vpop.eup %1141 }
 0x128   : > { %v573_v21 = vadd.f32 1.0, %v1142_v18  ;;  %1153 = vpow2.f32 %v955_v15 }
 0x129   : > { %v1144_v22 = vpop.eup %1143 }
 0x12a   : > { %1155 = vrcp.f32 %v573_v21  ;;  %v574_v24 = vadd.f32 1.0, %v1144_v22 }
 0x12c   : > { %v1146_v26 = vpop.eup %1145  ;;  %1157 = vrcp.f32 %v574_v24 }
 0x12d   : > { %v617_v28 = vsub.f32 1.0, %v1146_v26  ;;  %1159 = vpow2.f32 %v947_v23 }
 0x12e   : > { %v1148_v30 = vpop.eup %1147  ;;  %1161 = vpow2.f32 %v940_v25 }
 0x12f   : > { %v633_v57 = vmul.f32 %v1146_v26, %v617_v28  ;;  %v618_v31 = vsub.f32 1.0, %v1148_v30  ;;  %1163 = vpow2.f32 %v948_v27 }
 0x130   : > { %v1150_v20 = vpop.eup %1149 }
 0x131   : > { %v1152_v61 = vpop.eup %1151  ;;  %v634_v62 = vmul.f32 %v1148_v30, %v618_v31  ;;  %v619_v33 = vsub.f32 1.0, %v1150_v20 }
 0x132   : > { %v620_v34 = vsub.f32 1.0, %v1152_v61  ;;  %v1154_v38 = vpop.eup %1153 }
 0x133   : > { %v635_v36 = vmul.f32 %v1150_v20, %v619_v33  ;;  %v656_v37 = vadd.f32 %v634_v62, %v633_v57  ;;  %v575_v40 = vadd.f32 1.0, %v1154_v38 }
 0x134   : > { %v1156_v39 = vpop.eup %1155  ;;  %v636_v41 = vmul.f32 %v1152_v61, %v620_v34 }
 0x135   : > { %v657_v42 = vadd.f32 %v656_v37, %v635_v36  ;;  %v621_v43 = vsub.f32 1.0, %v1156_v39  ;;  %1165 = vrcp.f32 %v575_v40 }
 0x136   : > { %v1158_v45 = vpop.eup %1157 }
 0x137   : > { %v658_v46 = vadd.f32 %v657_v42, %v636_v41  ;;  %v1160_v48 = vpop.eup %1159  ;;  %v622_v49 = vsub.f32 1.0, %v1158_v45  ;;  %v637_v50 = vmul.f32 %v1156_v39, %v621_v43 }
 0x138   : > { %v1162_v52 = vpop.eup %1161  ;;  %v487_v53 = vadd.f32 1.0, %v1160_v48 }
 0x139   : > { %v1164_v54 = vpop.eup %1163  ;;  %v480_v55 = vadd.f32 1.0, %v1162_v52  ;;  %v638_v56 = vmul.f32 %v1158_v45, %v622_v49  ;;  %v659_v59 = vadd.f32 %v658_v46, %v637_v50 }
 0x13a   : > { %1167 = vrcp.f32 %v487_v53  ;;  %v488_v60 = vadd.f32 1.0, %v1164_v54 }
 0x13b   : > { %1169 = vrcp.f32 %v480_v55  ;;  %v660_v63 = vadd.f32 %v659_v59, %v638_v56 }
 0x13c   : > { %1171 = vrcp.f32 %v488_v60 }
 0x13d   : > { %1173 = vpow2.f32 %v957_v0 }
 0x13e   : > { %1175 = vpow2.f32 %v958_v1 }
 0x13f   : > { %v1166_v2 = vpop.eup %1165  ;;  %1177 = vpow2.f32 %v959_v3 }
 0x140   : > { %v623_v4 = vsub.f32 1.0, %v1166_v2  ;;  %1179 = vpow2.f32 %v960_v5 }
 0x142   : > { %v639_v6 = vmul.f32 %v1166_v2, %v623_v4 }
 0x144   : > { %v1168_v7 = vpop.eup %1167  ;;  %v661_v29 = vadd.f32 %v660_v63, %v639_v6 }
 0x145   : > { %v1170_v9 = vpop.eup %1169  ;;  %vm698_vm14 = vcmp.gt.f32.partialorder %v1168_v7, 0.5  ;;  %v963_v16 = vmul.f32 -1.442695, %v1168_v7 }
 0x146   : > { %v1172_v35 = vpop.eup %1171  ;;  %v979_v11 = vsel %vm698_vm14, 1.0, %v1290_v32  ;;  %v956_v12 = vmul.f32 -1.442695, %v1170_v9  ;;  %vm691_vm15 = vcmp.gt.f32.partialorder %v1170_v9, 0.5 }
 0x147   : > { %v972_v47 = vsel %vm691_vm15, 1.0, %v1290_v32  ;;  %vm699_vm0 = vcmp.gt.f32.partialorder %v1172_v35, 0.5  ;;  %v1174_v51 = vpop.eup %1173  ;;  %v964_v17 = vmul.f32 -1.442695, %v1172_v35 }
 0x148   : > { %1181 = vpow2.f32 %v956_v12  ;;  %v998_v13 = vpack.c.bf16 %v972_v47, %v971_v10  ;;  %v980_v14 = vsel %vm699_vm0, 1.0, %v1290_v32  ;;  %v1176_v18 = vpop.eup %1175  ;;  %v577_v21 = vadd.f32 1.0, %v1174_v51 }
 0x149   : > { %v1002_v15 = vpack.c.bf16 %v980_v14, %v979_v11  ;;  %1183 = vpow2.f32 %v961_v44  ;;  %v1178_v19 = vpop.eup %1177  ;;  %v578_v22 = vadd.f32 1.0, %v1176_v18 }
 0x14a   : > { %783 = vst [vmem:[%s1449_s7 + $0x18] sm:$0xff] %v998_v13  ;;  %1185 = vpow2.f32 %v962_v8  ;;  %v1180_v23 = vpop.eup %1179  ;;  %v579_v24 = vadd.f32 1.0, %v1178_v19 }
 0x14b   : > { %787 = vst [vmem:[%s1449_s7 + $0x38] sm:$0xff] %v1002_v15  ;;  %1187 = vpow2.f32 %v963_v16  ;;  %v580_v27 = vadd.f32 1.0, %v1180_v23 }
 0x14c   : > { %1189 = vpow2.f32 %v964_v17 }
 0x14d   : > { %1191 = vrcp.f32 %v577_v21 }
 0x14e   : > { %1193 = vrcp.f32 %v578_v22 }
 0x152   : > { %v1182_v58 = vpop.eup %1181 }
 0x153   : > { %v576_v25 = vadd.f32 1.0, %v1182_v58  ;;  %v1184_v26 = vpop.eup %1183 }
 0x154   : > { %v1186_v28 = vpop.eup %1185  ;;  %v581_v30 = vadd.f32 1.0, %v1184_v26 }
 0x155   : > { %1195 = vrcp.f32 %v576_v25  ;;  %v1188_v57 = vpop.eup %1187  ;;  %v582_v31 = vadd.f32 1.0, %v1186_v28 }
 0x156   : > { %1197 = vrcp.f32 %v579_v24  ;;  %v1190_v20 = vpop.eup %1189  ;;  %v583_v61 = vadd.f32 1.0, %v1188_v57 }
 0x157   : > { %1199 = vrcp.f32 %v580_v27  ;;  %v1192_v62 = vpop.eup %1191  ;;  %v584_v33 = vadd.f32 1.0, %v1190_v20 }
 0x158   : > { %1201 = vrcp.f32 %v581_v30  ;;  %v1194_v34 = vpop.eup %1193  ;;  %v625_v38 = vsub.f32 1.0, %v1192_v62 }
 0x159   : > { %1203 = vrcp.f32 %v582_v31  ;;  %v626_v40 = vsub.f32 1.0, %v1194_v34 }
 0x15a   : > { %1205 = vrcp.f32 %v583_v61  ;;  %v641_v45 = vmul.f32 %v1192_v62, %v625_v38 }
 0x15b   : > { %1207 = vrcp.f32 %v584_v33  ;;  %v642_v50 = vmul.f32 %v1194_v34, %v626_v40 }
 0x15f   : > { %v1196_v36 = vpop.eup %1195 }
 0x160   : > { %v624_v37 = vsub.f32 1.0, %v1196_v36  ;;  %v1198_v39 = vpop.eup %1197 }
 0x161   : > { %v1200_v42 = vpop.eup %1199  ;;  %v627_v43 = vsub.f32 1.0, %v1198_v39 }
 0x162   : > { %v640_v41 = vmul.f32 %v1196_v36, %v624_v37  ;;  %v1202_v48 = vpop.eup %1201  ;;  %v628_v49 = vsub.f32 1.0, %v1200_v42 }
 0x163   : > { %v1204_v53 = vpop.eup %1203  ;;  %v629_v54 = vsub.f32 1.0, %v1202_v48  ;;  %v643_v55 = vmul.f32 %v1198_v39, %v627_v43 }
 0x164   : > { %v662_v46 = vadd.f32 %v661_v29, %v640_v41  ;;  %v1206_v59 = vpop.eup %1205  ;;  %v630_v60 = vsub.f32 1.0, %v1204_v53  ;;  %v644_v63 = vmul.f32 %v1200_v42, %v628_v49 }
 0x165   : > { %v1208_v1 = vpop.eup %1207  ;;  %v631_v2 = vsub.f32 1.0, %v1206_v59  ;;  %v645_v3 = vmul.f32 %v1202_v48, %v629_v54 }
 0x166   : > { %v663_v52 = vadd.f32 %v662_v46, %v641_v45  ;;  %v632_v5 = vsub.f32 1.0, %v1208_v1  ;;  %v646_v6 = vmul.f32 %v1204_v53, %v630_v60 }
 0x167   : > { %v647_v9 = vmul.f32 %v1206_v59, %v631_v2 }
 0x168   : > { %v664_v56 = vadd.f32 %v663_v52, %v642_v50  ;;  %v648_v29 = vmul.f32 %v1208_v1, %v632_v5 }
 0x16a   : > { %v665_v0 = vadd.f32 %v664_v56, %v643_v55 }
 0x16c   : > { %v666_v4 = vadd.f32 %v665_v0, %v644_v63 }
 0x16e   : > { %v667_v7 = vadd.f32 %v666_v4, %v645_v3 }
 0x170   : > { %v668_v10 = vadd.f32 %v667_v7, %v646_v6 }
 0x172   : > { %v669_v35 = vadd.f32 %v668_v10, %v647_v9 }
 0x174   : > { %v670_v44 = vadd.f32 %v669_v35, %v648_v29 }
 0x176   : > { %671 = vadd.xlane.f32.xlu0 %v670_v44 }
 0x177   : > { %1222 = shalt.err (!%p1219_p5)
}
 0x178   : > { %s1223_s17 = scalar_lea.hbm %s1499_s11, 1024  ;;  %s1227_s26 = scalar_lea.hbm %s1562_s4, 2048 }
 0x179   : > { %p1224_p6 = scmp.ne.s32.totalorder %s1499_s11, %s1223_s17  ;;  %p1228_p10 = scmp.lt.u32.totalorder %s1499_s11, %s1562_s4 }
 0x17a   : > { %p1229_p11 = scmp.lt.u32.totalorder %s1227_s26, %s1223_s17  ;;  %p1231_p13 = scmp.lt.u32.totalorder %s1223_s17, %s1499_s11 }
 0x17b   : > { %p1225_p7 = pnand %p1224_p6, %p1364_p4 }
 0x17c   : > { %p1230_p12 = por %p1229_p11, %p1228_p10 }
 0x17d   : > { %p1226_p9 = pneg %p1225_p7 }
 0x17e   : > { %p1232_p0 = por %p1231_p13, %p1230_p12 }
 0x180   : > { %p1233_p1 = pnand %p1232_p0, %p1226_p9 }
 0x182   : > { %1236 = shalt.err (!%p1233_p1)
}
 0x183   : > { %s1292_s8 = smov 128   ;;  %s1293_s9 = smov 8   ;;  %v655_v15 = vld [vmem:[#allocation2] sm:$0x1] }
 0x184   : > { %1010 = dma.vmem_to_hbm [thread:$0]  (%p1364_p4), %s1502_s12, 1024, %s1499_s11, %s1506_s13, %s1292_s8, %s1292_s8, %s1293_s9  }
 0x185   : > { %s237_s15 = scalar_lea.vmem %s1563_s5, %s1381_s6 }
 0x203   : > { %v672_v32 = vpop.xlane.xlu0 %671 }
 0x204   : > { %v673_v11 = vrot.slane %v672_v32, 4 }
 0x206   : > { %v674_v12 = vadd.f32 %v673_v11, %v672_v32 }
 0x208   : > { %v675_v47 = vrot.slane %v674_v12, 2 }
 0x20a   : > { %v676_v8 = vadd.f32 %v675_v47, %v674_v12 }
 0x20c   : > { %v677_v13 = vrot.slane %v676_v8, 1 }
 0x20e   : > { %v678_v14 = vadd.f32 %v677_v13, %v676_v8 }
 0x210   : > { %1008 = vpush %v678_v14 }
 0x241   : > { %s1009_s10 = spop %1008 }
 0x242   : > { %v680_v16 = vstv %s1009_s10 }
 0x243   : > { %v681_v51 = vadd.f32 %v680_v16, %v655_v15 }
 0x245   : > { %683 = vst.msk [vmem:[#allocation2] sm:$0x1] %vm653_vm1, %v681_v51 }
 0x24c   : > { %v791_v17 = vld [vmem:[#allocation2] sm:$0x1] }
 0x24d   : > { %792 = vst.msk [vmem:[%s237_s15] sm:$0x1] %vm653_vm1, %v791_v17 }
 0x24e PF: > { %p1016_p4 = scmp.ge.s32.totalorder %s1287_s22, 2  ;;  %s830_s27 = sand.u32 1, %s1267_s18  }
 0x24f   : > { %s831_s11 = scalar_lea.sflag [#allocation6], %s830_s27 }
 0x250   : > { %p1013_p2 = pnand %p1016_p4, %p1371_p8 }
 0x252   : > { %1262 = dma.done.wait (!%p1013_p2), %s831_s11, 1024  }
 0x253   : > { %1264 = vsyncadd (!%p1013_p2), %s831_s11, 4294966272  ;;  %s20_s22 = sadd.s32 1, %s1287_s22   ;;  %s1566_s18 = smov %s1271_s0 }
 0x254   : > { %p17_p3 = scmp.ge.s32.totalorder %s20_s22, 4   ;;  %s1567_s0 = smov %s1275_s19 }
 0x255   : > { %s1568_s19 = smov %s1377_s30  ;;  %s1569_s20 = smov %s1283_s21 }
 0x256   : > { %s1570_s21 = smov %s1572_s25  ;;  %19 = sbr.rel (!%p17_p3) target bundleno = 4 (0x4), region = 87 }
 0x25d   :  { %842 = vsyncpa [#allocation6], 1 }
 0x25e   :  { %844 = vsyncpa [#allocation6 + $0x1], 1 }

</bundles_post_ra>
